<compile_context>
chip_gen: v7x
topology: tpu7x:2x2x1
jax: 0.10.0
libtpu: 0.0.40
codegen_flags: <defaults>
</compile_context>

<pallas_src>
import functools
import math

import jax
import jax.numpy as jnp
from jax.experimental import pallas as pl
from jax.experimental.pallas import tpu as pltpu

EPSILON = 1e-7


def f1_loss_kernel(a_ref, e_ref, out_ref, *, block_rows, num_blocks, rows_in_last):
    i = pl.program_id(0)

    # Native-dtype tiles streamed from HBM; upcast to f32 in VMEM.
    a = a_ref[...].astype(jnp.float32)   # (block_rows, C)
    e = e_ref[...].astype(jnp.float32)

    # Three lane reductions; fp / fn follow algebraically:
    #   sum((1-e)*a) = sum(a) - tp ,  sum(e*(1-a)) = sum(e) - tp
    tp = jnp.sum(e * a, axis=-1, keepdims=True)        # (block_rows, 1)
    sum_a = jnp.sum(a, axis=-1, keepdims=True)
    sum_e = jnp.sum(e, axis=-1, keepdims=True)
    fp = sum_a - tp
    fn = sum_e - tp

    precision = tp / (tp + fp + EPSILON)
    recall = tp / (tp + fn + EPSILON)
    f1 = 2.0 * precision * recall / (precision + recall + EPSILON)   # (block_rows, 1)

    if rows_in_last == block_rows:
        # No padded tail anywhere: every block stores an unmasked partial sum.
        out_ref[...] = jnp.sum(f1, axis=0, keepdims=True)            # (1, 1)
    else:
        @pl.when(i < num_blocks - 1)
        def _full_block():
            out_ref[...] = jnp.sum(f1, axis=0, keepdims=True)

        @pl.when(i == num_blocks - 1)
        def _tail_block():
            # Only the last block pays for the iota + compare + select.
            row = jax.lax.broadcasted_iota(jnp.int32, (block_rows, 1), 0)
            f1_masked = jnp.where(row < rows_in_last, f1, 0.0)
            out_ref[...] = jnp.sum(f1_masked, axis=0, keepdims=True)


def _default_vmem_budget_bytes():
    # Budget for the double-buffered input blocks (~6 MiB per input per buffer).
    # Scaled down on chips with less VMEM (v7x: 64 MiB physical per core).
    try:
        cap = pltpu.get_tpu_info().vmem_capacity_bytes
    except Exception:
        cap = 64 << 20  # conservative fallback (v7x per-core figure)
    return int(min(24 << 20, cap // 3))


def f1_loss(actual, expected, *, max_block_rows=None, vmem_budget_bytes=None):
    """Pallas F1 loss: 1 - mean over leading dims of per-row F1 (row = last dim)."""
    assert actual.shape == expected.shape, "actual / expected shape mismatch"
    if actual.ndim == 1:
        actual = actual[None, :]
        expected = expected[None, :]
    C = actual.shape[-1]
    R = math.prod(actual.shape[:-1])

    # Keep native dtypes: no wrapper-side f32 copies in HBM.
    a2 = actual.reshape(R, C)
    e2 = expected.reshape(R, C)

    # Row-block size from a VMEM budget, accounting for lane padding and
    # double buffering of both inputs.
    lane_pad = ((max(C, 1) + 127) // 128) * 128
    bytes_per_row = lane_pad * (a2.dtype.itemsize + e2.dtype.itemsize)
    budget = int(vmem_budget_bytes) if vmem_budget_bytes is not None \
        else _default_vmem_budget_bytes()
    tb = budget // (2 * bytes_per_row)            # 2x for double buffering
    if max_block_rows is not None:
        tb = min(tb, int(max_block_rows))
    if tb >= R:
        tb = R                                    # single full-extent block
    else:
        tb = max(8, (tb // 8) * 8)                # multiple of 8 sublanes
    num_blocks = int(pl.cdiv(R, tb))
    rows_in_last = R - (num_blocks - 1) * tb

    footprint = 2 * tb * bytes_per_row            # double-buffered input blocks
    vmem_limit = int(min(max(footprint + (4 << 20), 16 << 20), 64 << 20))

    kernel = functools.partial(
        f1_loss_kernel, block_rows=tb, num_blocks=num_blocks,
        rows_in_last=rows_in_last)

    partials = pl.pallas_call(
        kernel,
        out_shape=jax.ShapeDtypeStruct((num_blocks, 1, 1), jnp.float32),
        grid_spec=pltpu.PrefetchScalarGridSpec(
            num_scalar_prefetch=0,
            grid=(num_blocks,),
            in_specs=[pl.BlockSpec((tb, C), lambda i: (i, 0)),
                      pl.BlockSpec((tb, C), lambda i: (i, 0))],
            # Each grid step owns its own partial -> the row-block axis is fully
            # parallel (megacore split on v7x); final reduce happens outside.
            out_specs=pl.BlockSpec((None, 1, 1), lambda i: (i, 0, 0))),
        compiler_params=pltpu.CompilerParams(
            dimension_semantics=("parallel",),
            vmem_limit_bytes=vmem_limit),
    )(a2, e2)

    return 1.0 - jnp.sum(partials) / jnp.float32(R)


def reference_f1_loss(actual, expected, eps=EPSILON):
    # Pure-JAX reference mirroring the PyTorch formula (f32; TPU has no f64).
    a = actual.astype(jnp.float32)
    e = expected.astype(jnp.float32)
    tp = jnp.sum(e * a, axis=-1)
    fp = jnp.sum((1.0 - e) * a, axis=-1)
    fn = jnp.sum(e * (1.0 - a), axis=-1)
    precision = tp / (tp + fp + eps)
    recall = tp / (tp + fn + eps)
    f1 = 2.0 * precision * recall / (precision + recall + eps)
    return 1.0 - jnp.mean(f1)


if __name__ == "__main__":
    key = jax.random.PRNGKey(0)
    k1, k2, k3, k4 = jax.random.split(key, 4)

    # Test 1: lane-dense (batch, classes) f32 probabilities vs. binary targets.
    # Single full-extent block (budget >> R).
    B, C = 64, 128
    actual = jax.random.uniform(k1, (B, C), jnp.float32)                    # predicted probs
    expected = (jax.random.uniform(k2, (B, C)) < 0.3).astype(jnp.float32)   # binary labels

    loss = f1_loss(actual, expected)
    loss = jax.block_until_ready(loss)
    ref = reference_f1_loss(actual, expected)
    assert loss.shape == ()
    assert jnp.allclose(loss, ref, atol=1e-4), f"mismatch: {loss} vs {ref}"

    # Test 2: higher-rank, non-aligned dims, bf16 activations streamed natively.
    # max_block_rows forces the multi-block grid + tail-masking path.
    actual2 = jax.random.uniform(k3, (4, 300, 17), jnp.float32).astype(jnp.bfloat16)
    expected2 = (jax.random.uniform(k4, (4, 300, 17)) < 0.5).astype(jnp.float32)

    loss2 = f1_loss(actual2, expected2, max_block_rows=128)
    loss2 = jax.block_until_ready(loss2)
    ref2 = reference_f1_loss(actual2, expected2)
    assert jnp.allclose(loss2, ref2, atol=1e-4), f"mismatch: {loss2} vs {ref2}"

    print("KERNEL_OK")
</pallas_src>

<mosaic_0001>
module attributes {stable_mosaic.version = 11 : i64} {
  func.func @f1_loss_kernel(%arg0: i32, %arg1: memref<64x128xf32, #tpu.memory_space<vmem>>, %arg2: memref<64x128xf32, #tpu.memory_space<vmem>>, %arg3: memref<1x1x1xf32, #tpu.memory_space<vmem>>) attributes {dimension_semantics = [#tpu.dimension_semantics<parallel>], iteration_bounds = array<i64: 1>, scalar_prefetch = 0 : i64, scratch_operands = 0 : i64, tpu.core_type = #tpu.core_type<tc>, window_params = [{transform_indices = @transform_0, window_bounds = array<i64: 64, 128>}, {transform_indices = @transform_1, window_bounds = array<i64: 64, 128>}, {transform_indices = @transform_2, window_bounds = array<i64: 1, 1, 1>}]} {
    %c0 = arith.constant 0 : index
    %c0_0 = arith.constant 0 : index
    %0 = vector.load %arg1[%c0, %c0_0] : memref<64x128xf32, #tpu.memory_space<vmem>>, vector<64x128xf32>
    %c0_1 = arith.constant 0 : index
    %c0_2 = arith.constant 0 : index
    %1 = vector.load %arg2[%c0_1, %c0_2] : memref<64x128xf32, #tpu.memory_space<vmem>>, vector<64x128xf32>
    %2 = arith.mulf %1, %0 : vector<64x128xf32>
    %cst = arith.constant dense<0.000000e+00> : vector<64xf32>
    %3 = vector.multi_reduction <add>, %2, %cst [1] : vector<64x128xf32> to vector<64xf32>
    %4 = vector.shape_cast %3 : vector<64xf32> to vector<64x1xf32>
    %cst_3 = arith.constant dense<0.000000e+00> : vector<64xf32>
    %5 = vector.multi_reduction <add>, %0, %cst_3 [1] : vector<64x128xf32> to vector<64xf32>
    %6 = vector.shape_cast %5 : vector<64xf32> to vector<64x1xf32>
    %cst_4 = arith.constant dense<0.000000e+00> : vector<64xf32>
    %7 = vector.multi_reduction <add>, %1, %cst_4 [1] : vector<64x128xf32> to vector<64xf32>
    %8 = vector.shape_cast %7 : vector<64xf32> to vector<64x1xf32>
    %9 = arith.subf %6, %4 : vector<64x1xf32>
    %10 = arith.subf %8, %4 : vector<64x1xf32>
    %11 = arith.addf %4, %9 : vector<64x1xf32>
    %cst_5 = arith.constant 1.000000e-07 : f32
    %12 = vector.broadcast %cst_5 : f32 to vector<64x1xf32>
    %13 = arith.addf %11, %12 : vector<64x1xf32>
    %14 = arith.divf %4, %13 : vector<64x1xf32>
    %15 = arith.addf %4, %10 : vector<64x1xf32>
    %cst_6 = arith.constant 1.000000e-07 : f32
    %16 = vector.broadcast %cst_6 : f32 to vector<64x1xf32>
    %17 = arith.addf %15, %16 : vector<64x1xf32>
    %18 = arith.divf %4, %17 : vector<64x1xf32>
    %cst_7 = arith.constant 2.000000e+00 : f32
    %19 = vector.broadcast %cst_7 : f32 to vector<64x1xf32>
    %20 = arith.mulf %19, %14 : vector<64x1xf32>
    %21 = arith.mulf %20, %18 : vector<64x1xf32>
    %22 = arith.addf %14, %18 : vector<64x1xf32>
    %cst_8 = arith.constant 1.000000e-07 : f32
    %23 = vector.broadcast %cst_8 : f32 to vector<64x1xf32>
    %24 = arith.addf %22, %23 : vector<64x1xf32>
    %25 = arith.divf %21, %24 : vector<64x1xf32>
    %cst_9 = arith.constant dense<0.000000e+00> : vector<1xf32>
    %26 = vector.multi_reduction <add>, %25, %cst_9 [0] : vector<64x1xf32> to vector<1xf32>
    %27 = vector.shape_cast %26 : vector<1xf32> to vector<1x1xf32>
    %c0_10 = arith.constant 0 : index
    %c0_11 = arith.constant 0 : index
    %c0_12 = arith.constant 0 : index
    %28 = vector.load %arg3[%c0_10, %c0_11, %c0_12] : memref<1x1x1xf32, #tpu.memory_space<vmem>>, vector<1x1x1xf32>
    %29 = vector.shape_cast %28 : vector<1x1x1xf32> to vector<1x1xf32>
    %30 = vector.shape_cast %27 : vector<1x1xf32> to vector<1x1x1xf32>
    tpu.vector_store %arg3[%c0_10, %c0_11, %c0_12], %30 {strides = array<i32>} : memref<1x1x1xf32, #tpu.memory_space<vmem>>, vector<1x1x1xf32>,
    return
  }
  func.func @transform_0(%arg0: i32) -> (i32, i32) {
    %c0_i32 = arith.constant 0 : i32
    %c0_i32_0 = arith.constant 0 : i32
    return %arg0, %c0_i32 : i32, i32
  }
  func.func @transform_1(%arg0: i32) -> (i32, i32) {
    %c0_i32 = arith.constant 0 : i32
    %c0_i32_0 = arith.constant 0 : i32
    return %arg0, %c0_i32 : i32, i32
  }
  func.func @transform_2(%arg0: i32) -> (i32, i32, i32) {
    %c0_i32 = arith.constant 0 : i32
    %c0_i32_0 = arith.constant 0 : i32
    %c0_i32_1 = arith.constant 0 : i32
    return %arg0, %c0_i32, %c0_i32_0 : i32, i32, i32
  }
}

</mosaic_0001>

<bundles_post_ra>
// kernel: tpu_custom_call.1
= control target key start
LH: loop header
LB: loop body
LE: loop exit
PB: predicated region body
PF: predicated region fallthrough
CT: control target
= control target key end

     0   :  { %7 = vsyncpa [#allocation3], 0  ;;  %s528_s0 = inlined_call_operand.hbm [shape: f32[64,128], index: 0, kind: input, shape index: {}]   ;;  %s529_s1 = inlined_call_operand.hbm [shape: f32[64,128], index: 1, kind: input, shape index: {}]   ;;  %s530_s2 = inlined_call_operand.hbm [shape: f32[1,1,1], index: 2, kind: output, shape index: {}]  }
   0x1   :  { %8 = vsyncpa [#allocation6], 0 }
   0x2   :  { %9 = vsyncpa [#allocation4], 0  ;;  %s396_s9 = smov [#allocation2]   ;;  %s324_s13 = scalar_lea.hbm %s528_s0, 1024 }
   0x3   :  { %s15_s10 = sshll.u32 %s396_s9, 4  ;;  %p325_p0 = scmp.ne.s32.totalorder %s528_s0, %s324_s13  ;;  %s16_s10 = int_to_ptr.vmem [resolvable:$true] %s15_s10 }
   0x4   :  { %p328_p1 = scmp.lt.u32.totalorder %s324_s13, %s528_s0 }
   0x6   :  { %p330_p2 = pnand %p328_p1, %p325_p0 }
   0x8   :  { %333 = shalt.err (!%p330_p2)
}
   0x9   :  { %s334_s18 = scalar_lea.vmem %s16_s10, 1024  ;;  %p339_p4 = scmp.lt.s32.totalorder %s16_s10, %s16_s10 }
   0xa   :  { %p335_p3 = scmp.ne.s32.totalorder %s16_s10, %s334_s18  ;;  %p340_p5 = scmp.lt.s32.totalorder %s334_s18, %s334_s18 }
   0xc   :  { %p341_p6 = por %p340_p5, %p339_p4 }
   0xe   :  { %p342_p7 = pnand %p341_p6, %p335_p3 }
  0x10   :  { %345 = shalt.err (!%p342_p7)
}
  0x11   :  { %s397_s19 = smov 128   ;;  %s398_s20 = smov 8  }
  0x12   :  { %21 = dma.hbm_to_vmem [thread:$0]  %s528_s0, 1024, %s16_s10, [#allocation3], %s397_s19, %s397_s19, %s398_s20  }
  0x13   :  { %s399_s23 = smov [#allocation5]   ;;  %s346_s27 = scalar_lea.hbm %s529_s1, 1024 }
  0x14   :  { %s27_s24 = sshll.u32 %s399_s23, 4  ;;  %p347_p8 = scmp.ne.s32.totalorder %s529_s1, %s346_s27  ;;  %s28_s24 = int_to_ptr.vmem [resolvable:$true] %s27_s24 }
  0x15   :  { %p350_p9 = scmp.lt.u32.totalorder %s346_s27, %s529_s1 }
  0x17   :  { %p352_p10 = pnand %p350_p9, %p347_p8 }
  0x19   :  { %355 = shalt.err (!%p352_p10)
}
  0x1a   :  { %s356_s4 = scalar_lea.vmem %s28_s24, 1024  ;;  %p361_p12 = scmp.lt.s32.totalorder %s28_s24, %s28_s24 }
  0x1b   :  { %p357_p11 = scmp.ne.s32.totalorder %s28_s24, %s356_s4  ;;  %p362_p13 = scmp.lt.s32.totalorder %s356_s4, %s356_s4 }
  0x1d   :  { %p363_p0 = por %p362_p13, %p361_p12 }
  0x1f   :  { %p364_p1 = pnand %p363_p0, %p357_p11 }
  0x21   :  { %367 = shalt.err (!%p364_p1)
}
  0x22   :  { %33 = dma.hbm_to_vmem [thread:$0]  %s529_s1, 1024, %s28_s24, [#allocation6], %s397_s19, %s397_s19, %s398_s20  }
  0x23   :  { %390 = dma.done.wait [#allocation3], 1024  }
  0x24   :  { %391 = vsyncadd [#allocation3], 4294966272 }
  0x25   :  { %392 = dma.done.wait [#allocation6], 1024  }
  0x26   :  { %393 = vsyncadd [#allocation6], 4294966272  ;;  %v48_v0 = vld [vmem:[#allocation5] sm:$0xff]  ;;  %v41_v3 = vld [vmem:[#allocation2 + $0x8] sm:$0xff]  ;;  %s400_s1 = smov [#allocation7]   ;;  %vm253_vm0 = vcmask 0  }
  0x27   :  { %v40_v1 = vld [vmem:[#allocation2] sm:$0xff]  ;;  %96 = vadd.xlane.f32.xlu0 %v48_v0  ;;  %v49_v4 = vld [vmem:[#allocation5 + $0x8] sm:$0xff]  ;;  %v42_v6 = vld [vmem:[#allocation2 + $0x10] sm:$0xff]  ;;  %s261_s6 = sshll.u32 %s400_s1, 4  ;;  %s262_s6 = int_to_ptr.vmem [resolvable:$true] %s261_s6 }
  0x28   :  { %80 = vadd.xlane.f32.xlu1 %v40_v1  ;;  %v56_v2 = vmul.f32 %v48_v0, %v40_v1  ;;  %v57_v5 = vmul.f32 %v49_v4, %v41_v3  ;;  %v50_v7 = vld [vmem:[#allocation5 + $0x10] sm:$0xff]  ;;  %v43_v9 = vld [vmem:[#allocation2 + $0x18] sm:$0xff]  ;;  %v44_v12 = vld [vmem:[#allocation2 + $0x20] sm:$0xff]  ;;  %s368_s7 = scalar_lea.vmem %s262_s6, 16  ;;  %s372_s8 = scalar_lea.vmem %s262_s6, 32 }
  0x29   :  { %v58_v8 = vmul.f32 %v50_v7, %v42_v6  ;;  %v51_v10 = vld [vmem:[#allocation5 + $0x18] sm:$0xff]  ;;  %v52_v13 = vld [vmem:[#allocation5 + $0x20] sm:$0xff]  ;;  %v45_v15 = vld [vmem:[#allocation2 + $0x28] sm:$0xff]  ;;  %p369_p2 = scmp.ne.s32.totalorder %s262_s6, %s368_s7  ;;  %p373_p3 = scmp.lt.s32.totalorder %s262_s6, %s262_s6 }
  0x2a   :  { %v59_v11 = vmul.f32 %v51_v10, %v43_v9  ;;  %v60_v14 = vmul.f32 %v52_v13, %v44_v12  ;;  %v53_v16 = vld [vmem:[#allocation5 + $0x28] sm:$0xff]  ;;  %v46_v18 = vld [vmem:[#allocation2 + $0x30] sm:$0xff]  ;;  %v47_v21 = vld [vmem:[#allocation2 + $0x38] sm:$0xff]  ;;  %p374_p4 = scmp.lt.s32.totalorder %s372_s8, %s368_s7 }
  0x2b   :  { %64 = vadd.xlane.f32.xlu0 %v56_v2  ;;  %v61_v17 = vmul.f32 %v53_v16, %v45_v15  ;;  %v54_v19 = vld [vmem:[#allocation5 + $0x30] sm:$0xff]  ;;  %v55_v22 = vld [vmem:[#allocation5 + $0x38] sm:$0xff] }
  0x2c   :  { %82 = vadd.xlane.f32.xlu1 %v41_v3  ;;  %v62_v20 = vmul.f32 %v54_v19, %v46_v18  ;;  %v63_v23 = vmul.f32 %v55_v22, %v47_v21  ;;  %p375_p5 = por %p374_p4, %p373_p3 }
  0x2e   :  { %p376_p6 = pnand %p375_p5, %p369_p2 }
  0x2f   :  { %66 = vadd.xlane.f32.xlu0 %v57_v5 }
  0x30   :  { %98 = vadd.xlane.f32.xlu1 %v49_v4 }
  0x33   :  { %68 = vadd.xlane.f32.xlu0 %v58_v8 }
  0x34   :  { %84 = vadd.xlane.f32.xlu1 %v42_v6 }
  0x37   :  { %100 = vadd.xlane.f32.xlu0 %v50_v7 }
  0x38   :  { %70 = vadd.xlane.f32.xlu1 %v59_v11 }
  0x3b   :  { %86 = vadd.xlane.f32.xlu0 %v43_v9 }
  0x3c   :  { %102 = vadd.xlane.f32.xlu1 %v51_v10 }
  0x3f   :  { %72 = vadd.xlane.f32.xlu0 %v60_v14 }
  0x40   :  { %88 = vadd.xlane.f32.xlu1 %v44_v12 }
  0x43   :  { %104 = vadd.xlane.f32.xlu0 %v52_v13 }
  0x44   :  { %74 = vadd.xlane.f32.xlu1 %v61_v17 }
  0x47   :  { %90 = vadd.xlane.f32.xlu0 %v45_v15 }
  0x48   :  { %106 = vadd.xlane.f32.xlu1 %v53_v16 }
  0x4b   :  { %76 = vadd.xlane.f32.xlu0 %v62_v20 }
  0x4c   :  { %92 = vadd.xlane.f32.xlu1 %v46_v18 }
  0x4f   :  { %108 = vadd.xlane.f32.xlu0 %v54_v19 }
  0x50   :  { %78 = vadd.xlane.f32.xlu1 %v63_v23 }
  0x53   :  { %94 = vadd.xlane.f32.xlu0 %v47_v21 }
  0x54   :  { %110 = vadd.xlane.f32.xlu1 %v55_v22 }
  0xb4   :  { %v97_v24 = vpop.xlane.xlu0 %96 }
  0xb5   :  { %v81_v25 = vpop.xlane.xlu1 %80 }
  0xb8   :  { %v440_v27 = vpop.xlane.xlu0 %64 }
  0xb9   :  { %v83_v26 = vpop.xlane.xlu1 %82  ;;  %v112_v32 = vsub.f32 %v81_v25, %v440_v27  ;;  %v120_v33 = vsub.f32 %v97_v24, %v440_v27 }
  0xbb   :  { %v128_v38 = vadd.f32 %v112_v32, %v440_v27  ;;  %v160_v40 = vadd.f32 %v120_v33, %v440_v27 }
  0xbc   :  { %v442_v29 = vpop.xlane.xlu0 %66 }
  0xbd   :  { %v99_v28 = vpop.xlane.xlu1 %98  ;;  %v113_v34 = vsub.f32 %v83_v26, %v442_v29  ;;  %v136_v46 = vadd.f32 1e-07, %v128_v38  ;;  %v168_v50 = vadd.f32 1e-07, %v160_v40 }
  0xbe   :  { %v121_v35 = vsub.f32 %v99_v28, %v442_v29 }
  0xbf   :  { %v129_v42 = vadd.f32 %v113_v34, %v442_v29  ;;  %276 = vrcp.f32 %v136_v46 }
  0xc0   :  { %v444_v31 = vpop.xlane.xlu0 %68  ;;  %v161_v43 = vadd.f32 %v121_v35, %v442_v29  ;;  %278 = vrcp.f32 %v168_v50 }
  0xc1   :  { %v85_v30 = vpop.xlane.xlu1 %84  ;;  %v137_v52 = vadd.f32 1e-07, %v129_v42 }
  0xc2   :  { %v114_v39 = vsub.f32 %v85_v30, %v444_v31  ;;  %v169_v54 = vadd.f32 1e-07, %v161_v43 }
  0xc3   :  { %280 = vrcp.f32 %v137_v52 }
  0xc4   :  { %v101_v37 = vpop.xlane.xlu0 %100  ;;  %v130_v47 = vadd.f32 %v114_v39, %v444_v31  ;;  %282 = vrcp.f32 %v169_v54 }
  0xc5   :  { %v450_v36 = vpop.xlane.xlu1 %70  ;;  %v122_v41 = vsub.f32 %v101_v37, %v444_v31 }
  0xc6   :  { %v138_v58 = vadd.f32 1e-07, %v130_v47 }
  0xc7   :  { %v162_v51 = vadd.f32 %v122_v41, %v444_v31 }
  0xc8   :  { %v87_v45 = vpop.xlane.xlu0 %86  ;;  %284 = vrcp.f32 %v138_v58 }
  0xc9   :  { %v103_v44 = vpop.xlane.xlu1 %102  ;;  %v115_v49 = vsub.f32 %v87_v45, %v450_v36  ;;  %v170_v60 = vadd.f32 1e-07, %v162_v51  ;;  %v277_v10 = vpop.eup %276 }
  0xca   :  { %v123_v48 = vsub.f32 %v103_v44, %v450_v36  ;;  %v279_v13 = vpop.eup %278  ;;  %v145_v35 = vmul.f32 %v277_v10, %v440_v27 }
  0xcb   :  { %v131_v55 = vadd.f32 %v115_v49, %v450_v36  ;;  %286 = vrcp.f32 %v170_v60  ;;  %v489_v37 = vmul.f32 %v279_v13, %v440_v27 }
  0xcc   :  { %v163_v53 = vadd.f32 %v123_v48, %v450_v36  ;;  %v464_v57 = vpop.xlane.xlu0 %72 }
  0xcd   :  { %v89_v56 = vpop.xlane.xlu1 %88  ;;  %v139_v62 = vadd.f32 1e-07, %v131_v55  ;;  %v281_v16 = vpop.eup %280  ;;  %v208_v49 = vadd.f32 %v489_v37, %v145_v35 }
  0xce   :  { %v116_v59 = vsub.f32 %v89_v56, %v464_v57  ;;  %v171_v61 = vadd.f32 1e-07, %v163_v53  ;;  %v283_v20 = vpop.eup %282  ;;  %v147_v28 = vmul.f32 %v281_v16, %v442_v29 }
  0xcf   :  { %v484_v30 = vmul.f32 %v283_v20, %v442_v29 }
  0xd0   :  { %v105_v0 = vpop.xlane.xlu0 %104  ;;  %v132_v1 = vadd.f32 %v116_v59, %v464_v57  ;;  %288 = vrcp.f32 %v171_v61  ;;  %v216_v61 = vadd.f32 1e-07, %v208_v49  ;;  %v193_v10 = vmul.f32 2.0, %v147_v28 }
  0xd1   :  { %v467_v63 = vpop.xlane.xlu1 %74  ;;  %v124_v2 = vsub.f32 %v105_v0, %v464_v57  ;;  %290 = vrcp.f32 %v139_v62  ;;  %v209_v29 = vadd.f32 %v484_v30, %v147_v28 }
  0xd2   :  { %v140_v6 = vadd.f32 1e-07, %v132_v1  ;;  %v285_v21 = vpop.eup %284 }
  0xd3   :  { %v164_v3 = vadd.f32 %v124_v2, %v464_v57  ;;  %v149_v43 = vmul.f32 %v285_v21, %v444_v31  ;;  %v217_v56 = vadd.f32 1e-07, %v209_v29 }
  0xd4   :  { %v91_v5 = vpop.xlane.xlu0 %90 }
  0xd5   :  { %v107_v4 = vpop.xlane.xlu1 %106  ;;  %v172_v7 = vadd.f32 1e-07, %v164_v3  ;;  %v117_v9 = vsub.f32 %v91_v5, %v467_v63  ;;  %v287_v23 = vpop.eup %286  ;;  %v194_v20 = vmul.f32 2.0, %v149_v43 }
  0xd6   :  { %v125_v8 = vsub.f32 %v107_v4, %v467_v63  ;;  %v492_v38 = vmul.f32 %v287_v23, %v444_v31 }
  0xd7   :  { %292 = vrcp.f32 %v172_v7  ;;  %v133_v12 = vadd.f32 %v117_v9, %v467_v63 }
  0xd8   :  { %v165_v11 = vadd.f32 %v125_v8, %v467_v63  ;;  %v476_v15 = vpop.xlane.xlu0 %76  ;;  %294 = vrcp.f32 %v140_v6  ;;  %v210_v52 = vadd.f32 %v492_v38, %v149_v43 }
  0xd9   :  { %v93_v14 = vpop.xlane.xlu1 %92  ;;  %v141_v18 = vadd.f32 1e-07, %v133_v12 }
  0xda   :  { %v173_v17 = vadd.f32 1e-07, %v165_v11  ;;  %v118_v19 = vsub.f32 %v93_v14, %v476_v15  ;;  %v289_v26 = vpop.eup %288  ;;  %v218_v62 = vadd.f32 1e-07, %v210_v52 }
  0xdb   :  { %v291_v32 = vpop.eup %290  ;;  %v183_v46 = vmul.f32 %v289_v26, %v450_v36  ;;  %v202_v26 = vmul.f32 %v194_v20, %v492_v38 }
  0xdc   :  { %296 = vrcp.f32 %v173_v17  ;;  %v134_v22 = vadd.f32 %v118_v19, %v476_v15  ;;  %v109_v25 = vpop.xlane.xlu0 %108  ;;  %v151_v27 = vmul.f32 %v291_v32, %v450_v36  ;;  %v201_v19 = vmul.f32 %v193_v10, %v484_v30 }
  0xdd   :  { %v480_v24 = vpop.xlane.xlu1 %78  ;;  %298 = vrcp.f32 %v141_v18  ;;  %v126_v34 = vsub.f32 %v109_v25, %v476_v15 }
  0xde   :  { %v142_v33 = vadd.f32 1e-07, %v134_v22  ;;  %v211_v58 = vadd.f32 %v183_v46, %v151_v27  ;;  %v195_v21 = vmul.f32 2.0, %v151_v27 }
  0xdf   :  { %v166_v39 = vadd.f32 %v126_v34, %v476_v15 }
  0xe0   :  { %v95_v41 = vpop.xlane.xlu0 %94  ;;  %300 = vrcp.f32 %v142_v33  ;;  %v219_v2 = vadd.f32 1e-07, %v211_v58 }
  0xe1   :  { %v111_v40 = vpop.xlane.xlu1 %110  ;;  %v293_v42 = vpop.eup %292  ;;  %v119_v45 = vsub.f32 %v95_v41, %v480_v24  ;;  %v174_v47 = vadd.f32 1e-07, %v166_v39 }
  0xe2   :  { %v127_v44 = vsub.f32 %v111_v40, %v480_v24  ;;  %v295_v48 = vpop.eup %294  ;;  %v185_v31 = vmul.f32 %v293_v42, %v464_v57 }
  0xe3   :  { %v135_v51 = vadd.f32 %v119_v45, %v480_v24  ;;  %302 = vrcp.f32 %v174_v47  ;;  %v153_v36 = vmul.f32 %v295_v48, %v464_v57 }
  0xe4   :  { %v167_v50 = vadd.f32 %v127_v44, %v480_v24 }
  0xe5   :  { %v143_v55 = vadd.f32 1e-07, %v135_v51  ;;  %v212_v0 = vadd.f32 %v185_v31, %v153_v36  ;;  %v196_v39 = vmul.f32 2.0, %v153_v36 }
  0xe6   :  { %v297_v53 = vpop.eup %296  ;;  %v175_v54 = vadd.f32 1e-07, %v167_v50 }
  0xe7   :  { %v187_v59 = vmul.f32 %v297_v53, %v467_v63  ;;  %v299_v60 = vpop.eup %298  ;;  %v220_v5 = vadd.f32 1e-07, %v212_v0  ;;  %v204_v42 = vmul.f32 %v196_v39, %v185_v31 }
  0xe8   :  { %304 = vrcp.f32 %v175_v54  ;;  %v155_v1 = vmul.f32 %v299_v60, %v467_v63  ;;  %v192_v63 = vmul.f32 2.0, %v145_v35  ;;  %v203_v35 = vmul.f32 %v195_v21, %v183_v46 }
  0xe9   :  { %306 = vrcp.f32 %v143_v55 }
  0xea   :  { %308 = vrcp.f32 %v217_v56  ;;  %v213_v3 = vadd.f32 %v187_v59, %v155_v1  ;;  %v301_v4 = vpop.eup %300  ;;  %v200_v22 = vmul.f32 %v192_v63, %v489_v37 }
  0xeb   :  { %310 = vrcp.f32 %v216_v61  ;;  %v157_v7 = vmul.f32 %v301_v4, %v476_v15 }
  0xec   :  { %312 = vrcp.f32 %v218_v62  ;;  %v221_v57 = vadd.f32 1e-07, %v213_v3 }
  0xed   :  { %v303_v6 = vpop.eup %302  ;;  %314 = vrcp.f32 %v219_v2  ;;  %v198_v45 = vmul.f32 2.0, %v157_v7 }
  0xee   :  { %v189_v8 = vmul.f32 %v303_v6, %v476_v15  ;;  %316 = vrcp.f32 %v220_v5 }
  0xef   :  { %318 = vrcp.f32 %v221_v57 }
  0xf0   :  { %v214_v11 = vadd.f32 %v189_v8, %v157_v7  ;;  %v206_v47 = vmul.f32 %v198_v45, %v189_v8 }
  0xf2   :  { %v305_v9 = vpop.eup %304  ;;  %v222_v14 = vadd.f32 1e-07, %v214_v11 }
  0xf3   :  { %v191_v12 = vmul.f32 %v305_v9, %v480_v24  ;;  %v307_v13 = vpop.eup %306 }
  0xf4   :  { %v309_v16 = vpop.eup %308  ;;  %v159_v17 = vmul.f32 %v307_v13, %v480_v24  ;;  %320 = vrcp.f32 %v222_v14  ;;  %v197_v24 = vmul.f32 2.0, %v155_v1 }
  0xf5   :  { %v311_v18 = vpop.eup %310  ;;  %v227_v25 = vmul.f32 %v309_v16, %v201_v19 }
  0xf6   :  { %v313_v15 = vpop.eup %312  ;;  %v215_v23 = vadd.f32 %v191_v12, %v159_v17  ;;  %v225_v32 = vmul.f32 %v311_v18, %v200_v22  ;;  %v205_v37 = vmul.f32 %v197_v24, %v187_v59  ;;  %v199_v38 = vmul.f32 2.0, %v159_v17 }
  0xf7   :  { %v315_v28 = vpop.eup %314  ;;  %v229_v34 = vmul.f32 %v313_v15, %v202_v26 }
  0xf8   :  { %v223_v33 = vadd.f32 1e-07, %v215_v23  ;;  %v317_v40 = vpop.eup %316  ;;  %v240_v30 = vadd.f32 %v227_v25, %v225_v32  ;;  %v231_v41 = vmul.f32 %v315_v28, %v203_v35  ;;  %v207_v46 = vmul.f32 %v199_v38, %v191_v12 }
  0xf9   :  { %v319_v29 = vpop.eup %318  ;;  %v233_v44 = vmul.f32 %v317_v40, %v204_v42 }
  0xfa   :  { %322 = vrcp.f32 %v223_v33  ;;  %v241_v43 = vadd.f32 %v240_v30, %v229_v34  ;;  %v235_v48 = vmul.f32 %v319_v29, %v205_v37 }
  0xfc   :  { %v242_v49 = vadd.f32 %v241_v43, %v231_v41 }
  0xfe   :  { %v321_v27 = vpop.eup %320  ;;  %v243_v51 = vadd.f32 %v242_v49, %v233_v44 }
  0xff   :  { %v237_v50 = vmul.f32 %v321_v27, %v206_v47 }
 0x100   :  { %v244_v52 = vadd.f32 %v243_v51, %v235_v48 }
 0x102   :  { %v245_v55 = vadd.f32 %v244_v52, %v237_v50 }
 0x104   :  { %v323_v53 = vpop.eup %322 }
 0x105   :  { %v239_v54 = vmul.f32 %v323_v53, %v207_v46 }
 0x107   :  { %v246_v56 = vadd.f32 %v245_v55, %v239_v54 }
 0x109   :  { %v247_v58 = vrot.slane %v246_v56, 4 }
 0x10b   :  { %v248_v31 = vadd.f32 %v247_v58, %v246_v56 }
 0x10d   :  { %v249_v36 = vrot.slane %v248_v31, 2 }
 0x10f   :  { %v250_v60 = vadd.f32 %v249_v36, %v248_v31 }
 0x111   :  { %v251_v59 = vrot.slane %v250_v60, 1 }
 0x113   :  { %v252_v61 = vadd.f32 %v251_v59, %v250_v60 }
 0x115   :  { %254 = vst.msk [vmem:[#allocation7] sm:$0x1] %vm253_vm0, %v252_v61 }
 0x116   :  { %379 = shalt.err (!%p376_p6)
}
 0x117   :  { %s380_s11 = scalar_lea.hbm %s530_s2, 16 }
 0x118   :  { %p381_p7 = scmp.ne.s32.totalorder %s530_s2, %s380_s11  ;;  %p384_p8 = scmp.lt.u32.totalorder %s380_s11, %s530_s2 }
 0x11a   :  { %p386_p9 = pnand %p384_p8, %p381_p7 }
 0x11c   :  { %389 = shalt.err (!%p386_p9)
}
 0x11d   :  { %264 = dma.vmem_to_hbm [thread:$0]  %s262_s6, 16, %s530_s2, [#allocation4]  }
 0x11e   :  { %394 = dma.done.wait [#allocation4], 16  }
 0x11f   :  { %395 = vsyncadd [#allocation4], 4294967280 }
 0x120   :  { %268 = vsyncpa [#allocation3], 1 }
 0x121   :  { %269 = vsyncpa [#allocation6], 1 }
 0x122   :  { %270 = vsyncpa [#allocation4], 1 }

</bundles_post_ra>
